<compile_context>
chip_gen: v7x
topology: tpu7x:2x2x1
jax: 0.10.0
libtpu: 0.0.40
codegen_flags: <defaults>
</compile_context>

<pallas_src>
import numpy as np
import jax
import jax.numpy as jnp
from jax.experimental import pallas as pl
from jax.experimental.pallas import tpu as pltpu


def _round_up(v, m):
    return ((v + m - 1) // m) * m


def make_pos_embedding(max_logscale, N_freqs, logscale=True, *, tile_b=2048,
                       out_dtype=None):
    """Builds Pallas-backed positional-embedding callables.

    Returns (embed, embed_transposed, freqs):
      embed(x):            (B, D) -> (B, D*(1+2*N_freqs))   [PyTorch layout]
      embed_transposed(x): (B, D) -> (D*(1+2*N_freqs), B)   [lane-dense form a
                           downstream matmul should consume directly]
    """
    if logscale:
        freqs = 2.0 ** np.linspace(0.0, float(max_logscale), N_freqs)
    else:
        freqs = np.linspace(1.0, 2.0 ** float(max_logscale), N_freqs)
    freqs = [float(f) for f in freqs]  # compile-time constants baked into the kernel

    def pos_embed_kernel(xt_ref, ot_ref):
        # xt_ref: (D, TILE_B)        -- batch on the 128-lane axis (lane-dense)
        # ot_ref: (out_dim, TILE_B)  -- out_dim = D*(1+2*N_freqs)
        x = xt_ref[...]
        d = x.shape[0]
        ot_ref[0:d, :] = x.astype(ot_ref.dtype)
        for i, f in enumerate(freqs):
            xf = x * f                                   # VPU; negligible
            base = d * (1 + 2 * i)
            # Static sublane-slice stores: live range bounded to one sin/cos pair.
            ot_ref[base:base + d, :] = jnp.sin(xf).astype(ot_ref.dtype)          # EUP
            ot_ref[base + d:base + 2 * d, :] = jnp.cos(xf).astype(ot_ref.dtype)  # EUP

    def embed_transposed(x):
        B, D = x.shape
        out_dim = D * (1 + 2 * N_freqs)
        odt = x.dtype if out_dtype is None else jnp.dtype(out_dtype)

        tb = min(_round_up(tile_b, 128), _round_up(B, 128))
        Bp = _round_up(B, tb)

        # Layout plumbing only (D=3, so this is tiny): (B, D) -> (D, Bp).
        x_t = jnp.pad(x, ((0, Bp - B), (0, 0))).T

        bytes_in = Bp * D * x.dtype.itemsize
        bytes_out = Bp * out_dim * jnp.dtype(odt).itemsize
        cost = pl.CostEstimate(
            flops=Bp * D * N_freqs,                # the f*x multiplies
            transcendentals=2 * N_freqs * Bp * D,  # sin + cos
            bytes_accessed=bytes_in + bytes_out,
        )

        out_t = pl.pallas_call(
            pos_embed_kernel,
            out_shape=jax.ShapeDtypeStruct((out_dim, Bp), odt),
            grid_spec=pltpu.PrefetchScalarGridSpec(
                num_scalar_prefetch=0,
                grid=(Bp // tb,),
                in_specs=[pl.BlockSpec((D, tb), lambda i: (0, i))],
                out_specs=pl.BlockSpec((out_dim, tb), lambda i: (0, i)),
            ),
            compiler_params=pltpu.CompilerParams(
                dimension_semantics=("parallel",),      # megacore / multi-TC split
                vmem_limit_bytes=16 * 1024 * 1024,
            ),
            cost_estimate=cost,
        )(x_t)
        return out_t[:, :B]                             # (out_dim, B), drop padding

    def embed(x):
        # PyTorch-compatible (B, 6*N_freqs+3) layout.  The final transpose is
        # pure layout plumbing; prefer embed_transposed() in a real pipeline.
        return embed_transposed(x).T

    return embed, embed_transposed, jnp.asarray(freqs, dtype=jnp.float32)


def pos_embedding_reference(x, freqs):
    outs = [x]
    for f in freqs:
        outs.append(jnp.sin(f * x))
        outs.append(jnp.cos(f * x))
    return jnp.concatenate(outs, axis=-1)


if __name__ == "__main__":
    max_logscale = 3
    N_freqs = 4
    B, D = 200, 3  # non-multiple of 128: exercises padding and a 2-step grid

    key = jax.random.PRNGKey(0)
    x = jax.random.normal(key, (B, D), dtype=jnp.float32)

    embed, embed_t, freqs = make_pos_embedding(
        max_logscale, N_freqs, logscale=True, tile_b=128)

    out = jax.block_until_ready(embed(x))

    ref = pos_embedding_reference(x, freqs)
    assert out.shape == (B, 6 * N_freqs + 3), out.shape
    assert jnp.allclose(out, ref, atol=1e-5, rtol=1e-5), \
        float(jnp.max(jnp.abs(out - ref)))

    # Lane-dense form a downstream MLP should consume directly.
    out_t = jax.block_until_ready(embed_t(x))
    assert out_t.shape == (6 * N_freqs + 3, B), out_t.shape
    assert jnp.allclose(out_t, ref.T, atol=1e-5, rtol=1e-5)

    # Non-logscale frequency spacing path.
    embed2, _, freqs2 = make_pos_embedding(
        max_logscale, N_freqs, logscale=False, tile_b=128)
    out2 = jax.block_until_ready(embed2(x))
    ref2 = pos_embedding_reference(x, freqs2)
    assert jnp.allclose(out2, ref2, atol=1e-5, rtol=1e-5)

    print("KERNEL_OK")
</pallas_src>

<mosaic_0001>
module attributes {stable_mosaic.version = 11 : i64} {
  func.func @pos_embed_kernel(%arg0: i32, %arg1: memref<3x128xf32, #tpu.memory_space<vmem>>, %arg2: memref<27x128xf32, #tpu.memory_space<vmem>>) attributes {dimension_semantics = [#tpu.dimension_semantics<parallel>], iteration_bounds = array<i64: 2>, scalar_prefetch = 0 : i64, scratch_operands = 0 : i64, tpu.core_type = #tpu.core_type<tc>, window_params = [{transform_indices = @transform_0, window_bounds = array<i64: 3, 128>}, {transform_indices = @transform_1, window_bounds = array<i64: 27, 128>}]} {
    %c0 = arith.constant 0 : index
    %c0_0 = arith.constant 0 : index
    %0 = vector.load %arg1[%c0, %c0_0] : memref<3x128xf32, #tpu.memory_space<vmem>>, vector<3x128xf32>
    %c0_1 = arith.constant 0 : index
    %c0_2 = arith.constant 0 : index
    %1 = vector.load %arg2[%c0_1, %c0_2] : memref<27x128xf32, #tpu.memory_space<vmem>>, vector<3x128xf32>
    tpu.vector_store %arg2[%c0_1, %c0_2], %0 {strides = array<i32>} : memref<27x128xf32, #tpu.memory_space<vmem>>, vector<3x128xf32>,
    %cst = arith.constant 1.000000e+00 : f32
    %2 = vector.broadcast %cst : f32 to vector<3x128xf32>
    %3 = arith.mulf %0, %2 : vector<3x128xf32>
    %4 = math.sin %3 : vector<3x128xf32>
    %c3 = arith.constant 3 : index
    %c0_3 = arith.constant 0 : index
    %5 = vector.load %arg2[%c3, %c0_3] : memref<27x128xf32, #tpu.memory_space<vmem>>, vector<3x128xf32>
    tpu.vector_store %arg2[%c3, %c0_3], %4 {strides = array<i32>} : memref<27x128xf32, #tpu.memory_space<vmem>>, vector<3x128xf32>,
    %6 = math.cos %3 : vector<3x128xf32>
    %c6 = arith.constant 6 : index
    %c0_4 = arith.constant 0 : index
    %7 = vector.load %arg2[%c6, %c0_4] : memref<27x128xf32, #tpu.memory_space<vmem>>, vector<3x128xf32>
    tpu.vector_store %arg2[%c6, %c0_4], %6 {strides = array<i32>} : memref<27x128xf32, #tpu.memory_space<vmem>>, vector<3x128xf32>,
    %cst_5 = arith.constant 2.000000e+00 : f32
    %8 = vector.broadcast %cst_5 : f32 to vector<3x128xf32>
    %9 = arith.mulf %0, %8 : vector<3x128xf32>
    %10 = math.sin %9 : vector<3x128xf32>
    %c9 = arith.constant 9 : index
    %c0_6 = arith.constant 0 : index
    %11 = vector.load %arg2[%c9, %c0_6] : memref<27x128xf32, #tpu.memory_space<vmem>>, vector<3x128xf32>
    tpu.vector_store %arg2[%c9, %c0_6], %10 {strides = array<i32>} : memref<27x128xf32, #tpu.memory_space<vmem>>, vector<3x128xf32>,
    %12 = math.cos %9 : vector<3x128xf32>
    %c12 = arith.constant 12 : index
    %c0_7 = arith.constant 0 : index
    %13 = vector.load %arg2[%c12, %c0_7] : memref<27x128xf32, #tpu.memory_space<vmem>>, vector<3x128xf32>
    tpu.vector_store %arg2[%c12, %c0_7], %12 {strides = array<i32>} : memref<27x128xf32, #tpu.memory_space<vmem>>, vector<3x128xf32>,
    %cst_8 = arith.constant 4.000000e+00 : f32
    %14 = vector.broadcast %cst_8 : f32 to vector<3x128xf32>
    %15 = arith.mulf %0, %14 : vector<3x128xf32>
    %16 = math.sin %15 : vector<3x128xf32>
    %c15 = arith.constant 15 : index
    %c0_9 = arith.constant 0 : index
    %17 = vector.load %arg2[%c15, %c0_9] : memref<27x128xf32, #tpu.memory_space<vmem>>, vector<3x128xf32>
    tpu.vector_store %arg2[%c15, %c0_9], %16 {strides = array<i32>} : memref<27x128xf32, #tpu.memory_space<vmem>>, vector<3x128xf32>,
    %18 = math.cos %15 : vector<3x128xf32>
    %c18 = arith.constant 18 : index
    %c0_10 = arith.constant 0 : index
    %19 = vector.load %arg2[%c18, %c0_10] : memref<27x128xf32, #tpu.memory_space<vmem>>, vector<3x128xf32>
    tpu.vector_store %arg2[%c18, %c0_10], %18 {strides = array<i32>} : memref<27x128xf32, #tpu.memory_space<vmem>>, vector<3x128xf32>,
    %cst_11 = arith.constant 8.000000e+00 : f32
    %20 = vector.broadcast %cst_11 : f32 to vector<3x128xf32>
    %21 = arith.mulf %0, %20 : vector<3x128xf32>
    %22 = math.sin %21 : vector<3x128xf32>
    %c21 = arith.constant 21 : index
    %c0_12 = arith.constant 0 : index
    %23 = vector.load %arg2[%c21, %c0_12] : memref<27x128xf32, #tpu.memory_space<vmem>>, vector<3x128xf32>
    tpu.vector_store %arg2[%c21, %c0_12], %22 {strides = array<i32>} : memref<27x128xf32, #tpu.memory_space<vmem>>, vector<3x128xf32>,
    %24 = math.cos %21 : vector<3x128xf32>
    %c24 = arith.constant 24 : index
    %c0_13 = arith.constant 0 : index
    %25 = vector.load %arg2[%c24, %c0_13] : memref<27x128xf32, #tpu.memory_space<vmem>>, vector<3x128xf32>
    tpu.vector_store %arg2[%c24, %c0_13], %24 {strides = array<i32>} : memref<27x128xf32, #tpu.memory_space<vmem>>, vector<3x128xf32>,
    return
  }
  func.func @transform_0(%arg0: i32) -> (i32, i32) {
    %c0_i32 = arith.constant 0 : i32
    %c0_i32_0 = arith.constant 0 : i32
    return %c0_i32, %arg0 : i32, i32
  }
  func.func @transform_1(%arg0: i32) -> (i32, i32) {
    %c0_i32 = arith.constant 0 : i32
    %c0_i32_0 = arith.constant 0 : i32
    return %c0_i32, %arg0 : i32, i32
  }
}

</mosaic_0001>

<bundles_post_ra>
// kernel: tpu_custom_call.1
= control target key start
LH: loop header
LB: loop body
LE: loop exit
PB: predicated region body
PF: predicated region fallthrough
CT: control target
= control target key end

     0   :  { %6 = vsyncpa [#allocation3], 0  ;;  %s1801_s0 = inlined_call_operand.hbm [shape: f32[3,256], index: 0, kind: input, shape index: {}]   ;;  %s1802_s1 = inlined_call_operand.hbm [shape: f32[27,256], index: 1, kind: output, shape index: {}]  }
   0x1   :  { %8 = vsyncpa [#allocation3 + $0x1], 0 }
   0x2   :  { %9 = vsyncpa [#allocation4], 0 }
   0x3   :  { %11 = vsyncpa [#allocation4 + $0x1], 0  ;;  %s1309_s6 = smov 0   ;;  %s1311_s7 = smov 0  }
   0x4   :  { %s1313_s8 = smov 0   ;;  %s1315_s9 = smov 0  }
   0x5 LB: > { %s1330_s10 = sadd.s32 4294967295, %s1286_s9   ;;  %s1059_s11 = sadd.s32 4294967294, %s1286_s9   ;;  %s1286_s9 = sphi %s1315_s9, %s1821_s9   ;;  %s1282_s8 = sphi %s1313_s8, %s1820_s8   ;;  %s1278_s7 = sphi %s1311_s7, %s1819_s7   ;;  %s1274_s6 = sphi %s1309_s6, %s1818_s6  }
   0x6   : > { %s1334_s12 = sadd.s32 1, %s1286_s9   ;;  %s24_s13 = sadd.s32 1, %s1282_s8 }
   0x7   : > { %s21_s14 = ssub.s32 %s1286_s9, %s1334_s12  ;;  %p31_p0 = scmp.ne.s32.totalorder %s1282_s8, %s1278_s7 }
   0x8   : > { %p22_p1 = scmp.eq.s32.totalorder %s21_s14, 0  ;;  %p32_p2 = scmp.eq.s32.totalorder %s1286_s9, 0 }
   0x9   : > { %p37_p3 = scmp.ne.s32.totalorder %s1278_s7, %s1274_s6  ;;  %p38_p4 = scmp.eq.s32.totalorder %s1330_s10, 0 }
   0xa   : > { %s1346_s15 = scalar_select %p22_p1, %s1282_s8, %s24_s13  }
   0xb   : > { %p1348_p5 = por %p32_p2, %p31_p0  ;;  %p1352_p6 = por %p38_p4, %p37_p3 }
   0xc   : > { %p61_p7 = scmp.eq.s32.totalorder %s1330_s10, 1  ;;  %p67_p8 = scmp.eq.s32.totalorder %s1059_s11, 1 }
   0xd   : > { %p1131_p10 = scmp.lt.s32.totalorder %s1286_s9, 2  ;;  %s87_s20 = sand.u32 1, %s1282_s8  }
   0xe   : > { %p1359_p11 = por %p61_p7, %p31_p0  ;;  %p1363_p12 = por %p67_p8, %p37_p3 }
   0xf   : > { %s1063_s21 = sshll.u32 %s1286_s9, 6  ;;  %s1062_s22 = sshll.u32 %s87_s20, 2 }
  0x10   : > { %s1806_s18 = scalar_select %p1359_p11, 1, 0 }
  0x11   : > { %s1807_s19 = scalar_select %p1363_p12, 1, 0 }
  0x12   : > { %s1372_s25 = scalar_lea.hbm %s1801_s0, %s1063_s21  ;;  %s91_s26 = scalar_lea.vmem [#allocation2], %s1062_s22 }
  0x13   : > { %s98_s27 = sshll.u32 %s91_s26, 4  ;;  %p1376_p13 = pnand %p1131_p10, %p1348_p5  ;;  %s1380_s27 = int_to_ptr.vmem [resolvable:$true] %s98_s27 }
  0x14   : > { %s88_s29 = scalar_lea.sflag [#allocation3], %s87_s20  ;;  %s1190_s30 = scalar_lea.hbm %s1372_s25, 64 }
  0x15   : > { %p1191_p2 = scmp.ne.s32.totalorder %s1372_s25, %s1190_s30  ;;  %p1192_p3 = pneg %p1376_p13 }
  0x16   : > { %s1195_s4 = scalar_lea.hbm %s1801_s0, 128  ;;  %p1196_p5 = scmp.lt.u32.totalorder %s1372_s25, %s1801_s0 }
  0x17   : > { %p1193_p4 = pnand %p1192_p3, %p1191_p2  ;;  %p1197_p8 = scmp.lt.u32.totalorder %s1195_s4, %s1190_s30 }
  0x18   : > { %p1199_p9 = scmp.lt.u32.totalorder %s1190_s30, %s1372_s25 }
  0x19   : > { %p1194_p7 = pneg %p1193_p4  ;;  %p1198_p10 = por %p1197_p8, %p1196_p5 }
  0x1b   : > { %p1200_p0 = por %p1199_p9, %p1198_p10 }
  0x1d   : > { %p1201_p1 = pnand %p1200_p0, %p1194_p7 }
  0x1f   : > { %1204 = shalt.err (!%p1201_p1)
}
  0x20   : > { %s1205_s13 = scalar_lea.vmem %s1380_s27, 64  ;;  %s1288_s14 = smov [#allocation2]  }
  0x21   : > { %p1206_p2 = scmp.ne.s32.totalorder %s1380_s27, %s1205_s13  ;;  %s1210_s16 = sshll.u32 %s1288_s14, 4  ;;  %s1211_s16 = int_to_ptr.vmem [resolvable:$false] %s1210_s16 }
  0x22   : > { %s1212_s20 = scalar_lea.vmem %s1211_s16, 128  ;;  %p1213_p11 = scmp.lt.s32.totalorder %s1380_s27, %s1211_s16 }
  0x23   : > { %p1208_p4 = pnand %p1206_p2, %p1192_p3  ;;  %p1214_p5 = scmp.lt.s32.totalorder %s1212_s20, %s1205_s13 }
  0x25   : > { %p1209_p12 = pneg %p1208_p4  ;;  %p1215_p8 = por %p1214_p5, %p1213_p11 }
  0x27   : > { %p1216_p9 = pnand %p1215_p8, %p1209_p12 }
  0x29   : > { %1219 = shalt.err (!%p1216_p9)
}
  0x2a   : > { %1126 = dma.hbm_to_vmem [thread:$0]  (!%p1376_p13), %s1372_s25, 64, %s1380_s27, %s88_s29  }
  0x2b   : > { %p1809_p0 = scmp.lt.s32.totalorder %s1286_s9, 3  ;;  %p1810_p1 = scmp.ge.s32.totalorder %s1286_s9, 1 }
  0x2d   : > { %p104_p3 = pnand %p1810_p1, %p1809_p0 }
  0x2e   : > { %s1414_s21 = sand.u32 (!%p104_p3), 1, %s1278_s7  }
  0x2f   : > { %107 = sbr.rel (%p104_p3) target bundleno = 219 (0xdb), region = 24  ;;  %s1065_s22 = sshll.u32 (!%p104_p3), %s1414_s21, 2 }
  0x30   : > { %s110_s23 = scalar_lea.sflag (!%p104_p3), [#allocation3], %s1414_s21  ;;  %s113_s24 = scalar_lea.vmem (!%p104_p3), [#allocation2], %s1065_s22 }
  0x36   : > { %1265 = dma.done.wait (%p1352_p6), %s110_s23, 64  }
  0x37   : > { %1267 = vsyncadd (%p1352_p6), %s110_s23, 4294967232  ;;  %s1066_s25 = sshll.u32 %s1414_s21, 5  ;;  %v1423_v0 = vld [vmem:[%s113_s24] sm:$0x7]  ;;  %v1289_v26 = vmov 683565275  }
  0x38   : > { %s1425_s26 = scalar_lea.vmem [#allocation5], %s1066_s25  ;;  %v134_v1 = vand.u32 2147483647, %v1423_v0  ;;  %v137_v2 = vand.u32 2139095040, %v1423_v0  ;;  %v1432_v3 = vmul.f32 2.0, %v1423_v0  ;;  %v1435_v4 = vmul.f32 4.0, %v1423_v0 }
  0x39   : > { %133 = vst [vmem:[%s1425_s26] sm:$0x7] %v1423_v0  ;;  %v1290_v28 = vmov 2475754826   ;;  %v1291_v30 = vmov 2131351028   ;;  %vm136_vm13 = vcmp.lt.s32.totalorder %v1423_v0, 0 }
  0x3a   : > { %v138_v5 = vshrl.u32 %v137_v2, 23  ;;  %v141_v6 = vand.u32 8388607, %v134_v1  ;;  %v344_v7 = vand.u32 2147483647, %v1432_v3  ;;  %v347_v8 = vand.u32 2139095040, %v1432_v3 }
  0x3b   : > { %v557_v12 = vand.u32 2139095040, %v1435_v4  ;;  %v1292_v32 = vmov 2102212464   ;;  %v1293_v34 = vmov 920167782   ;;  %s986_s17 = sshll.u32 %s1425_s26, 4  ;;  %s1749_s17 = int_to_ptr.vmem [resolvable:$true] %s986_s17 }
  0x3c   : > { %v1067_v9 = vadd.s32 4294967169, %v138_v5  ;;  %v348_v10 = vshrl.u32 %v347_v8, 23  ;;  %v351_v11 = vand.u32 8388607, %v344_v7  ;;  %v142_v14 = vor.u32 8388608, %v141_v6  ;;  %s1100_s27 = sshll.u32 %s1330_s10, 7 }
  0x3d   : > { %v558_v17 = vshrl.u32 %v557_v12, 23  ;;  %v1294_v41 = vmov 1326507024   ;;  %vm1544_vm14 = vcmp.le.f32.partialorder %v134_v1, 0.7853982  ;;  %s1755_s10 = scalar_lea.hbm %s1802_s1, %s1100_s27  ;;  %s974_s30 = scalar_lea.sflag [#allocation4], %s1414_s21 }
  0x3e   : > { %v144_v13 = vadd.s32 1, %v1067_v9  ;;  %v1075_v15 = vadd.s32 4294967169, %v348_v10  ;;  %v352_v16 = vor.u32 8388608, %v351_v11  ;;  %v1444_v22 = vshll.u32 %v142_v14, 8  ;;  %s1220_s2 = scalar_lea.vmem %s1749_s17, 512  ;;  %p1815_p11 = scmp.ne.s32.totalorder %s1806_s18, 0 }
  0x3f   : > { %v1448_v24 = vadd.s32 4294967169, %v558_v17  ;;  %p1221_p6 = scmp.ne.s32.totalorder %s1749_s17, %s1220_s2  ;;  %s1295_s3 = smov [#allocation5]  }
  0x40   : > { %vm145_vm0 = vcmp.gt.s32.totalorder %v144_v13, 0  ;;  %v354_v19 = vadd.s32 1, %v1075_v15  ;;  %v1446_v23 = vshll.u32 %v352_v16, 8  ;;  %s1224_s4 = sshll.u32 %s1295_s3, 4  ;;  %s1225_s4 = int_to_ptr.vmem [resolvable:$false] %s1224_s4 }
  0x41   : > { %v146_v18 = vsel %vm145_vm0, %v144_v13, 0  ;;  %p1222_p12 = pnand %p1221_p6, %p1815_p11  ;;  %s1226_s5 = scalar_lea.vmem %s1225_s4, 1024 }
  0x42   : > { %v147_v20 = vshrl.u32 %v146_v18, 5  ;;  %v148_v21 = vand.u32 31, %v146_v18  ;;  %vm355_vm1 = vcmp.gt.s32.totalorder %v354_v19, 0  ;;  %p1227_p7 = scmp.lt.s32.totalorder %s1749_s17, %s1225_s4  ;;  %p1228_p10 = scmp.lt.s32.totalorder %s1226_s5, %s1220_s2 }
  0x43   : > { %v356_v46 = vsel %vm355_vm1, %v354_v19, 0  ;;  %p1223_p13 = pneg %p1222_p12 }
  0x44   : > { %v149_v25 = vsub.s32 32, %v148_v21  ;;  %v151_v27 = vshll.u32 %v1289_v26, %v148_v21  ;;  %v154_v29 = vshll.u32 %v1290_v28, %v148_v21  ;;  %v157_v31 = vshll.u32 %v1291_v30, %v148_v21  ;;  %p1229_p2 = por %p1228_p10, %p1227_p7 }
  0x45   : > { %v160_v33 = vshll.u32 %v1292_v32, %v148_v21  ;;  %v163_v35 = vshll.u32 %v1293_v34, %v148_v21  ;;  %vm166_vm2 = vcmp.lt.s32.totalorder %v147_v20, 1  ;;  %vm167_vm3 = vcmp.lt.s32.totalorder %v147_v20, 2 }
  0x46   : > { %v150_v36 = vshrl.u32 %v1289_v26, %v149_v25  ;;  %v152_v37 = vshrl.u32 %v1290_v28, %v149_v25  ;;  %v155_v38 = vshrl.u32 %v1291_v30, %v149_v25  ;;  %v158_v39 = vshrl.u32 %v1292_v32, %v149_v25  ;;  %p1230_p4 = pnand %p1229_p2, %p1223_p13 }
  0x47   : > { %v161_v40 = vshrl.u32 %v1293_v34, %v149_v25  ;;  %v164_v42 = vshrl.u32 %v1294_v41, %v149_v25  ;;  %vm168_vm4 = vcmp.lt.s32.totalorder %v147_v20, 3  ;;  %vm169_vm5 = vcmp.lt.s32.totalorder %v147_v20, 4 }
  0x48   : > { %v153_v43 = vor.u32 %v152_v37, %v151_v27  ;;  %v156_v44 = vor.u32 %v155_v38, %v154_v29  ;;  %v159_v45 = vor.u32 %v158_v39, %v157_v31  ;;  %v357_v49 = vshrl.u32 %v356_v46, 5 }
  0x49   : > { %v162_v47 = vor.u32 %v161_v40, %v160_v33  ;;  %v165_v48 = vor.u32 %v164_v42, %v163_v35  ;;  %v358_v50 = vand.u32 31, %v356_v46  ;;  %v564_v29 = vadd.s32 1, %v1448_v24 }
  0x4a   : > { %v170_v51 = vsel %vm166_vm2, %v150_v36, %v153_v43  ;;  %v171_v52 = vsel %vm169_vm5, %v159_v45, 2102212464  ;;  %v174_v53 = vsel %vm166_vm2, %v153_v43, %v156_v44  ;;  %v178_v54 = vsel %vm166_vm2, %v156_v44, %v159_v45 }
  0x4b   : > { %v172_v55 = vsel %vm168_vm4, %v156_v44, %v171_v52  ;;  %v175_v56 = vsel %vm169_vm5, %v162_v47, 920167782  ;;  %v179_v57 = vsel %vm169_vm5, %v165_v48, 1326507024  ;;  %v359_v58 = vsub.s32 32, %v358_v50 }
  0x4c   : > { %v173_v59 = vsel %vm167_vm3, %v170_v51, %v172_v55  ;;  %v176_v60 = vsel %vm168_vm4, %v159_v45, %v175_v56  ;;  %v180_v61 = vsel %vm168_vm4, %v162_v47, %v179_v57  ;;  %v361_v62 = vshll.u32 %v1289_v26, %v358_v50 }
  0x4d   : > { %v177_v63 = vsel %vm167_vm3, %v174_v53, %v176_v60  ;;  %v181_v2 = vsel %vm167_vm3, %v178_v54, %v180_v61  ;;  %v189_v5 = vmul.u32 %v1444_v22, %v173_v59  ;;  %v360_v6 = vshrl.u32 %v1289_v26, %v359_v58 }
  0x4e   : > { %v1475_v8 = vmul.u32.u64.low %v1444_v22, %v181_v2  ;;  %v1476_v9 = vmul.u32.u64.high %v1444_v22, %v181_v2, %v1475_v8  ;;  %v1479_v10 = vmul.u32.u64.low %v1444_v22, %v177_v63  ;;  %v1480_v11 = vmul.u32.u64.high %v1444_v22, %v177_v63, %v1479_v10 }
  0x4f   : > { %v362_v12 = vshrl.u32 %v1290_v28, %v359_v58  ;;  %v364_v13 = vshll.u32 %v1290_v28, %v358_v50  ;;  %v365_v14 = vshrl.u32 %v1291_v30, %v359_v58  ;;  %v367_v15 = vshll.u32 %v1291_v30, %v358_v50 }
  0x50   : > { %v368_v16 = vshrl.u32 %v1292_v32, %v359_v58  ;;  %v370_v17 = vshll.u32 %v1292_v32, %v358_v50  ;;  %v371_v18 = vshrl.u32 %v1293_v34, %v359_v58  ;;  %v373_v19 = vshll.u32 %v1293_v34, %v358_v50 }
  0x51   : > { %v363_v20 = vor.u32 %v362_v12, %v361_v62  ;;  %v366_v21 = vor.u32 %v365_v14, %v364_v13  ;;  %v374_v22 = vshrl.u32 %v1294_v41, %v359_v58  ;;  %vm376_vm6 = vcmp.lt.s32.totalorder %v357_v49, 1 }
  0x52   : > { %vm191_vm7 = vc.u32 %v1476_v9, %v1479_v10  ;;  %v192_v25 = vadd.s32 1, %v1480_v11  ;;  %v369_v27 = vor.u32 %v368_v16, %v367_v15  ;;  %v372_v31 = vor.u32 %v371_v18, %v370_v17 }
  0x53   : > { %v375_v33 = vor.u32 %v374_v22, %v373_v19  ;;  %vm377_vm8 = vcmp.lt.s32.totalorder %v357_v49, 2  ;;  %vm378_vm9 = vcmp.lt.s32.totalorder %v357_v49, 3  ;;  %vm379_vm10 = vcmp.lt.s32.totalorder %v357_v49, 4 }
  0x54   : > { %v193_v35 = vsel %vm191_vm7, %v192_v25, %v1480_v11  ;;  %v380_v36 = vsel %vm376_vm6, %v360_v6, %v363_v20  ;;  %v384_v37 = vsel %vm376_vm6, %v363_v20, %v366_v21  ;;  %v381_v39 = vsel %vm379_vm10, %v369_v27, 2102212464 }
  0x55   : > { %v194_v38 = vadd.s32 %v193_v35, %v189_v5  ;;  %v385_v40 = vsel %vm379_vm10, %v372_v31, 920167782  ;;  %v388_v42 = vsel %vm376_vm6, %v366_v21, %v369_v27  ;;  %v382_v43 = vsel %vm378_vm9, %v366_v21, %v381_v39 }
  0x56   : > { %v386_v44 = vsel %vm378_vm9, %v369_v27, %v385_v40  ;;  %v389_v45 = vsel %vm379_vm10, %v375_v33, 1326507024  ;;  %vm565_vm11 = vcmp.gt.s32.totalorder %v564_v29, 0  ;;  %v554_v48 = vand.u32 2147483647, %v1435_v4 }
  0x57   : > { %v195_v24 = vadd.s32 536870912, %v194_v38  ;;  %v387_v46 = vsel %vm377_vm8, %v384_v37, %v386_v44  ;;  %v390_v47 = vsel %vm378_vm9, %v372_v31, %v389_v45  ;;  %v383_v50 = vsel %vm377_vm8, %v380_v36, %v382_v43 }
  0x58   : > { %v391_v51 = vsel %vm377_vm8, %v388_v42, %v390_v47  ;;  %v1505_v52 = vmul.u32.u64.low %v1446_v23, %v387_v46  ;;  %v1506_v53 = vmul.u32.u64.high %v1446_v23, %v387_v46, %v1505_v52  ;;  %v566_v57 = vsel %vm565_vm11, %v564_v29, 0 }
  0x59   : > { %v196_v54 = vshrl.u32 %v195_v24, 30  ;;  %v1510_v55 = vmul.u32.u64.low %v1446_v23, %v391_v51  ;;  %v1511_v56 = vmul.u32.u64.high %v1446_v23, %v391_v51, %v1510_v55  ;;  %v568_v58 = vand.u32 31, %v566_v57 }
  0x5a   : > { %v399_v60 = vmul.u32 %v1446_v23, %v383_v50  ;;  %v1515_v61 = vmul.f32 8.0, %v1423_v0  ;;  %v402_v49 = vadd.s32 1, %v1506_v53  ;;  %v561_v62 = vand.u32 8388607, %v554_v48 }
  0x5b   : > { %v197_v59 = vshll.u32 %v196_v54, 30  ;;  %vm401_vm12 = vc.u32 %v1511_v56, %v1505_v52  ;;  %v569_v6 = vsub.s32 32, %v568_v58  ;;  %v220_v13 = vsub.s32 4, %v196_v54 }
  0x5c   : > { %v764_v2 = vand.u32 2147483647, %v1515_v61  ;;  %v403_v5 = vsel %vm401_vm12, %v402_v49, %v1506_v53  ;;  %v562_v23 = vor.u32 8388608, %v561_v62  ;;  %v767_v14 = vand.u32 2139095040, %v1515_v61 }
  0x5d   : > { %v198_v63 = vsub.s32 %v194_v38, %v197_v59  ;;  %v404_v11 = vadd.s32 %v403_v5, %v399_v60  ;;  %v571_v17 = vshll.u32 %v1289_v26, %v568_v58  ;;  %v572_v18 = vshrl.u32 %v1290_v28, %v569_v6 }
  0x5e   : > { %v1527_v15 = vand.u32 8388607, %v764_v2  ;;  %v574_v19 = vshll.u32 %v1290_v28, %v568_v58  ;;  %v575_v21 = vshrl.u32 %v1291_v30, %v569_v6  ;;  %v577_v22 = vshll.u32 %v1291_v30, %v568_v58 }
  0x5f   : > { %v200_v8 = vsub.s32 0, %v198_v63  ;;  %v405_v16 = vadd.s32 536870912, %v404_v11  ;;  %v578_v25 = vshrl.u32 %v1292_v32, %v569_v6  ;;  %v190_v27 = vadd.s32 %v1479_v10, %v1476_v9 }
  0x60   : > { %v1540_v31 = vshll.u32 %v562_v23, 8  ;;  %v567_v36 = vshrl.u32 %v566_v57, 5  ;;  %v580_v37 = vshll.u32 %v1292_v32, %v568_v58  ;;  %v581_v38 = vshrl.u32 %v1293_v34, %v569_v6 }
  0x61   : > { %v1068_v12 = vmin.u32 %v200_v8, %v198_v63  ;;  %v1538_v29 = vshrl.u32 %v405_v16, 30  ;;  %v221_v39 = vsel %vm136_vm13, %v220_v13, %v196_v54  ;;  %v768_v10 = vshrl.u32 %v767_v14, 23 }
  0x62   : > { %v772_v40 = vor.u32 8388608, %v1527_v15  ;;  %v573_v42 = vor.u32 %v572_v18, %v571_v17  ;;  %v576_v1 = vor.u32 %v575_v21, %v574_v19  ;;  %v579_v43 = vor.u32 %v578_v25, %v577_v22 }
  0x63   : > { %v202_v20 = vclz %v1068_v12  ;;  %v407_v9 = vshll.u32 %v1538_v29, 30  ;;  %v583_v24 = vshll.u32 %v1293_v34, %v568_v58  ;;  %v584_v46 = vshrl.u32 %v1294_v41, %v569_v6 }
  0x64   : > { %v582_v53 = vor.u32 %v581_v38, %v580_v37  ;;  %v570_v55 = vshrl.u32 %v1289_v26, %v569_v6  ;;  %vm586_vm0 = vcmp.lt.s32.totalorder %v567_v36, 1  ;;  %vm589_vm1 = vcmp.lt.s32.totalorder %v567_v36, 4 }
  0x65   : > { %v1069_v35 = vadd.s32 4294967294, %v202_v20  ;;  %v1554_v45 = vsub.s32 %v404_v11, %v407_v9  ;;  %v400_v60 = vadd.s32 %v1505_v52, %v1511_v56  ;;  %v591_v49 = vsel %vm589_vm1, %v579_v43, 2102212464 }
  0x66   : > { %v585_v62 = vor.u32 %v584_v46, %v583_v24  ;;  %vm587_vm2 = vcmp.lt.s32.totalorder %v567_v36, 2  ;;  %vm588_vm3 = vcmp.lt.s32.totalorder %v567_v36, 3  ;;  %v594_v8 = vsel %vm586_vm0, %v573_v42, %v576_v1 }
  0x67   : > { %vm1070_vm15 = vcmp.lt.s32.totalorder %v1069_v35, 0  ;;  %v410_v54 = vsub.s32 0, %v1554_v45  ;;  %v595_v6 = vsel %vm589_vm1, %v582_v53, 920167782  ;;  %v223_v11 = vsel %vm1544_vm14, 0, %v221_v39 }
  0x68   : > { %v205_v44 = vsel %vm1070_vm15, 0, %v1069_v35  ;;  %vm346_vm4 = vcmp.lt.s32.totalorder %v1432_v3, 0  ;;  %v590_v52 = vsel %vm586_vm0, %v570_v55, %v573_v42  ;;  %v592_v56 = vsel %vm588_vm3, %v576_v1, %v591_v49 }
  0x69   : > { %v206_v47 = vsub.s32 32, %v205_v44  ;;  %v207_v50 = vshll.u32 %v198_v63, %v205_v44  ;;  %v210_v51 = vsub.s32 4294967266, %v205_v44  ;;  %v1076_v58 = vmin.u32 %v410_v54, %v1554_v45 }
  0x6a   : > { %v596_v14 = vsel %vm588_vm3, %v579_v43, %v595_v6  ;;  %v598_v16 = vsel %vm586_vm0, %v576_v1, %v579_v43  ;;  %v430_v18 = vsub.s32 4, %v1538_v29  ;;  %v599_v20 = vsel %vm589_vm1, %v585_v62, 1326507024 }
  0x6b   : > { %v208_v57 = vshrl.u32 %v190_v27, %v206_v47  ;;  %v211_v59 = vadd.s32 127, %v210_v51  ;;  %v412_v23 = vclz %v1076_v58  ;;  %v597_v19 = vsel %vm587_vm2, %v594_v8, %v596_v14 }
  0x6c   : > { %vm1578_vm5 = vcmp.le.f32.partialorder %v344_v7, 0.7853982  ;;  %v600_v25 = vsel %vm588_vm3, %v582_v53, %v599_v20  ;;  %v1584_v27 = vmul.u32.u64.low %v1540_v31, %v597_v19  ;;  %v1585_v35 = vmul.u32.u64.high %v1540_v31, %v597_v19, %v1584_v27 }
  0x6d   : > { %v209_v63 = vor.u32 %v208_v57, %v207_v50  ;;  %v212_v5 = vshll.u32 %v211_v59, 23  ;;  %v1077_v17 = vadd.s32 4294967294, %v412_v23  ;;  %v593_v37 = vsel %vm587_vm2, %v590_v52, %v592_v56 }
  0x6e   : > { %v601_v38 = vsel %vm587_vm2, %v598_v16, %v600_v25  ;;  %v1091_v39 = vadd.s32 4294967169, %v768_v10  ;;  %v227_v50 = vadd.s32 3, %v223_v11  ;;  %v609_v51 = vmul.u32 %v1540_v31, %v593_v37 }
  0x6f   : > { %v213_v12 = vor.u32 4788187, %v212_v5  ;;  %v216_v13 = vcvt.s32.f32 %v209_v63  ;;  %vm1078_vm6 = vcmp.lt.s32.totalorder %v1077_v17, 0  ;;  %v612_v53 = vadd.s32 1, %v1585_v35 }
  0x70   : > { %v415_v42 = vsel %vm1078_vm6, 0, %v1077_v17  ;;  %v1591_v7 = vmul.u32.u64.low %v1540_v31, %v601_v38  ;;  %v1592_v1 = vmul.u32.u64.high %v1540_v31, %v601_v38, %v1591_v7  ;;  %v774_v46 = vadd.s32 1, %v1091_v39 }
  0x71   : > { %v214_v21 = vand.u32 2147483647, %v213_v12  ;;  %v416_v43 = vsub.s32 32, %v415_v42  ;;  %v417_v44 = vshll.u32 %v1554_v45, %v415_v42  ;;  %v420_v24 = vsub.s32 4294967266, %v415_v42 }
  0x72   : > { %v1597_v36 = vand.u32 3, %v223_v11  ;;  %vm775_vm7 = vcmp.gt.s32.totalorder %v774_v46, 0  ;;  %v431_v45 = vsel %vm346_vm4, %v430_v18, %v1538_v29  ;;  %vm611_vm8 = vc.u32 %v1592_v1, %v1584_v27 }
  0x73   : > { %v217_v9 = vmul.f32 %v216_v13, %v214_v21  ;;  %v418_v10 = vshrl.u32 %v400_v60, %v416_v43  ;;  %v421_v54 = vadd.s32 127, %v420_v24  ;;  %v776_v57 = vsel %vm775_vm7, %v774_v46, 0 }
  0x74   : > { %v613_v60 = vsel %vm611_vm8, %v612_v53, %v1585_v35  ;;  %v1610_v58 = vand.u32 3, %v227_v50  ;;  %v778_v63 = vand.u32 31, %v776_v57  ;;  %v433_v8 = vsel %vm1578_vm5, 0, %v431_v45 }
  0x75   : > { %v218_v47 = vxor.u32 2147483648, %v217_v9  ;;  %v419_v59 = vor.u32 %v418_v10, %v417_v44  ;;  %v422_v49 = vshll.u32 %v421_v54, 23  ;;  %v614_v62 = vadd.s32 %v613_v60, %v609_v51 }
  0x76   : > { %v779_v11 = vsub.s32 32, %v778_v63  ;;  %v781_v33 = vshll.u32 %v1289_v26, %v778_v63  ;;  %v784_v23 = vshll.u32 %v1290_v28, %v778_v63  ;;  %v787_v56 = vshll.u32 %v1291_v30, %v778_v63 }
  0x77   : > { %v219_v55 = vsel %vm136_vm13, %v218_v47, %v217_v9  ;;  %v423_v5 = vor.u32 4788187, %v422_v49  ;;  %v426_v29 = vcvt.s32.f32 %v419_v59  ;;  %v615_v6 = vadd.s32 536870912, %v614_v62 }
  0x78   : > { %v222_v31 = vsel %vm1544_vm14, %v1423_v0, %v219_v55  ;;  %v790_v12 = vshll.u32 %v1292_v32, %v778_v63  ;;  %v1619_v13 = vshll.u32 %v1293_v34, %v778_v63  ;;  %v1623_v16 = vshrl.u32 %v776_v57, 5 }
  0x79   : > { %1174 = vcosq.f32 %v222_v31  ;;  %v424_v52 = vand.u32 2147483647, %v423_v5  ;;  %v1621_v14 = vshrl.u32 %v615_v6, 30  ;;  %v782_v17 = vshrl.u32 %v1290_v28, %v779_v11 }
  0x7a   : > { %1176 = vsinq.f32 %v222_v31  ;;  %v785_v18 = vshrl.u32 %v1291_v30, %v779_v11  ;;  %vm226_vm9 = vweird.f32 %v1423_v0  ;;  %v788_v20 = vshrl.u32 %v1292_v32, %v779_v11 }
  0x7b   : > { %v427_v19 = vmul.f32 %v426_v29, %v424_v52  ;;  %v791_v21 = vshrl.u32 %v1293_v34, %v779_v11  ;;  %v794_v25 = vshrl.u32 %v1294_v41, %v779_v11  ;;  %v617_v35 = vshll.u32 %v1621_v14, 30 }
  0x7c   : > { %v780_v37 = vshrl.u32 %v1289_v26, %v779_v11  ;;  %v783_v38 = vor.u32 %v782_v17, %v781_v33  ;;  %v786_v39 = vor.u32 %v785_v18, %v784_v23  ;;  %v789_v42 = vor.u32 %v788_v20, %v787_v56 }
  0x7d   : > { %v428_v9 = vxor.u32 2147483648, %v427_v19  ;;  %v792_v28 = vor.u32 %v791_v21, %v790_v12  ;;  %v795_v30 = vor.u32 %v794_v25, %v1619_v13  ;;  %vm333_vm10 = vcmp.lt.s32.totalorder %v1597_v36, 2 }
  0x7e   : > { %vm334_vm11 = vcmp.eq.s32.totalorder %v1597_v36, 0  ;;  %v437_v32 = vadd.s32 3, %v433_v8  ;;  %v1636_v7 = vsub.s32 %v614_v62, %v617_v35  ;;  %vm229_vm12 = vcmp.lt.s32.totalorder %v1610_v58, 2 }
  0x7f   : > { %vm337_vm13 = vcmp.eq.s32.totalorder %v1597_v36, 2  ;;  %v429_v26 = vsel %vm346_vm4, %v428_v9, %v427_v19  ;;  %v1642_v34 = vand.u32 3, %v433_v8  ;;  %vm233_vm14 = vcmp.eq.s32.totalorder %v1610_v58, 2 }
  0x80   : > { %v432_v43 = vsel %vm1578_vm5, %v1432_v3, %v429_v26  ;;  %v620_v44 = vsub.s32 0, %v1636_v7  ;;  %vm796_vm15 = vcmp.lt.s32.totalorder %v1623_v16, 1  ;;  %vm230_vm0 = vcmp.eq.s32.totalorder %v1610_v58, 0 }
  0x81   : > { %1178 = vcosq.f32 %v432_v43  ;;  %v800_v47 = vsel %vm796_vm15, %v780_v37, %v783_v38  ;;  %v1653_v51 = vand.u32 3, %v437_v32  ;;  %vm547_vm1 = vcmp.eq.s32.totalorder %v1642_v34, 2 }
  0x82   : > { %1180 = vsinq.f32 %v432_v43  ;;  %v1084_v53 = vmin.u32 %v620_v44, %v1636_v7  ;;  %vm799_vm2 = vcmp.lt.s32.totalorder %v1623_v16, 4  ;;  %v1662_v54 = vshll.u32 %v772_v40, 8 }
  0x83   : > { %v1175_v41 = vpop.eup %1174  ;;  %vm544_vm3 = vcmp.eq.s32.totalorder %v1642_v34, 0  ;;  %v801_v31 = vsel %vm799_vm2, %v789_v42, 2102212464  ;;  %v610_v40 = vadd.s32 %v1584_v27, %v1592_v1  ;;  %vm798_vm4 = vcmp.lt.s32.totalorder %v1623_v16, 3 }
  0x84   : > { %v1177_v24 = vpop.eup %1176  ;;  %v234_v46 = vxor.u32 2147483648, %v1175_v41  ;;  %v622_v57 = vclz %v1084_v53  ;;  %vm436_vm5 = vweird.f32 %v1432_v3  ;;  %vm797_vm6 = vcmp.lt.s32.totalorder %v1623_v16, 2 }
  0x85   : > { %v231_v50 = vxor.u32 2147483648, %v1177_v24  ;;  %v802_v36 = vsel %vm798_vm4, %v786_v39, %v801_v31  ;;  %v804_v27 = vsel %vm796_vm15, %v783_v38, %v786_v39  ;;  %v805_v1 = vsel %vm799_vm2, %v792_v28, 920167782 }
  0x86   : > { %v235_v22 = vsel %vm233_vm14, %v234_v46, %v1177_v24  ;;  %v339_v10 = vsel %vm337_vm13, %v234_v46, %v1177_v24  ;;  %v1085_v62 = vadd.s32 4294967294, %v622_v57  ;;  %v808_v0 = vsel %vm796_vm15, %v786_v39, %v789_v42 }
  0x87   : > { %v232_v55 = vsel %vm230_vm0, %v1175_v41, %v231_v50  ;;  %v336_v45 = vsel %vm334_vm11, %v1175_v41, %v231_v50  ;;  %v803_v58 = vsel %vm797_vm6, %v800_v47, %v802_v36  ;;  %v806_v63 = vsel %vm798_vm4, %v789_v42, %v805_v1 }
  0x88   : > { %v236_v59 = vsel %vm229_vm12, %v232_v55, %v235_v22  ;;  %v340_v15 = vsel %vm333_vm10, %v336_v45, %v339_v10  ;;  %vm1086_vm7 = vcmp.lt.s32.totalorder %v1085_v62, 0  ;;  %v809_v5 = vsel %vm799_vm2, %v795_v30, 1326507024 }
  0x89   : > { %v237_v49 = vsel %vm226_vm9, nan, %v236_v59  ;;  %v341_v60 = vsel %vm226_vm9, nan, %v340_v15  ;;  %vm443_vm8 = vcmp.eq.s32.totalorder %v1653_v51, 2  ;;  %v625_v29 = vsel %vm1086_vm7, 0, %v1085_v62 }
  0x8a   : > { %238 = vst [vmem:[%s1425_s26 + $0x3] sm:$0x7] %v237_v49  ;;  %342 = vst [vmem:[%s1425_s26 + $0x6] sm:$0x7] %v341_v60  ;;  %v807_v8 = vsel %vm797_vm6, %v804_v27, %v806_v63  ;;  %v810_v6 = vsel %vm798_vm4, %v792_v28, %v809_v5  ;;  %v626_v11 = vsub.s32 32, %v625_v29  ;;  %v627_v33 = vshll.u32 %v1636_v7, %v625_v29 }
  0x8b   : > { %v630_v23 = vsub.s32 4294967266, %v625_v29  ;;  %v811_v52 = vsel %vm797_vm6, %v808_v0, %v810_v6  ;;  %v1179_v56 = vpop.eup %1178  ;;  %v1711_v17 = vmul.u32.u64.low %v1662_v54, %v807_v8  ;;  %v1712_v18 = vmul.u32.u64.high %v1662_v54, %v807_v8, %v1711_v17 }
  0x8c   : > { %v1707_v12 = vmul.u32.u64.low %v1662_v54, %v811_v52  ;;  %v1708_v13 = vmul.u32.u64.high %v1662_v54, %v811_v52, %v1707_v12  ;;  %v1181_v19 = vpop.eup %1180  ;;  %vm440_vm9 = vcmp.eq.s32.totalorder %v1653_v51, 0  ;;  %v444_v20 = vxor.u32 2147483648, %v1179_v56 }
  0x8d   : > { %v628_v21 = vshrl.u32 %v610_v40, %v626_v11  ;;  %v631_v25 = vadd.s32 127, %v630_v23  ;;  %vm439_vm10 = vcmp.lt.s32.totalorder %v1653_v51, 2  ;;  %v441_v35 = vxor.u32 2147483648, %v1181_v19 }
  0x8e   : > { %vm543_vm11 = vcmp.lt.s32.totalorder %v1642_v34, 2  ;;  %v819_v16 = vmul.u32 %v1662_v54, %v803_v58  ;;  %v445_v37 = vsel %vm443_vm8, %v444_v20, %v1181_v19  ;;  %v549_v38 = vsel %vm547_vm1, %v444_v20, %v1181_v19 }
  0x8f   : > { %v629_v39 = vor.u32 %v628_v21, %v627_v33  ;;  %v632_v9 = vshll.u32 %v631_v25, 23  ;;  %v442_v42 = vsel %vm440_vm9, %v1179_v56, %v441_v35  ;;  %v546_v28 = vsel %vm544_vm3, %v1179_v56, %v441_v35 }
  0x90   : > { %v820_v30 = vadd.s32 %v1711_v17, %v1708_v13  ;;  %vm821_vm12 = vc.u32 %v1708_v13, %v1711_v17  ;;  %v446_v32 = vsel %vm439_vm10, %v442_v42, %v445_v37  ;;  %v550_v7 = vsel %vm543_vm11, %v546_v28, %v549_v38 }
  0x91   : > { %v633_v26 = vor.u32 4788187, %v632_v9  ;;  %v636_v41 = vcvt.s32.f32 %v629_v39  ;;  %v447_v43 = vsel %vm436_vm5, nan, %v446_v32  ;;  %v551_v44 = vsel %vm436_vm5, nan, %v550_v7 }
  0x92   : > { %v822_v24 = vadd.s32 1, %v1712_v18  ;;  %448 = vst [vmem:[%s1425_s26 + $0x9] sm:$0x7] %v447_v43  ;;  %552 = vst [vmem:[%s1425_s26 + $0xc] sm:$0x7] %v551_v44  ;;  %v640_v46 = vsub.s32 4, %v1621_v14  ;;  %vm646_vm6 = vweird.f32 %v1435_v4 }
  0x93   : > { %v634_v34 = vand.u32 2147483647, %v633_v26  ;;  %vm556_vm13 = vcmp.lt.s32.totalorder %v1435_v4, 0  ;;  %vm555_vm14 = vcmp.le.f32.partialorder %v554_v48, 0.7853982  ;;  %vm766_vm7 = vcmp.lt.s32.totalorder %v1515_v61, 0 }
  0x94   : > { %v823_v47 = vsel %vm821_vm12, %v822_v24, %v1712_v18  ;;  %v641_v3 = vsel %vm556_vm13, %v640_v46, %v1621_v14  ;;  %vm765_vm8 = vcmp.le.f32.partialorder %v764_v2, 0.7853982 }
  0x95   : > { %v637_v50 = vmul.f32 %v636_v41, %v634_v34  ;;  %v824_v51 = vadd.s32 %v823_v47, %v819_v16  ;;  %v643_v45 = vsel %vm555_vm14, 0, %v641_v3 }
  0x96   : > { %v647_v31 = vadd.s32 3, %v643_v45  ;;  %v752_v49 = vand.u32 3, %v643_v45 }
  0x97   : > { %v638_v53 = vxor.u32 2147483648, %v637_v50  ;;  %v825_v22 = vadd.s32 536870912, %v824_v51 }
  0x98   : > { %v648_v40 = vand.u32 3, %v647_v31  ;;  %vm757_vm0 = vcmp.eq.s32.totalorder %v752_v49, 2  ;;  %vm754_vm2 = vcmp.eq.s32.totalorder %v752_v49, 0  ;;  %vm753_vm4 = vcmp.lt.s32.totalorder %v752_v49, 2 }
  0x99   : > { %v639_v10 = vsel %vm556_vm13, %v638_v53, %v637_v50  ;;  %v826_v54 = vshrl.u32 %v825_v22, 30 }
  0x9a   : > { %v642_v55 = vsel %vm555_vm14, %v1435_v4, %v639_v10  ;;  %vm653_vm15 = vcmp.eq.s32.totalorder %v648_v40, 2  ;;  %vm650_vm1 = vcmp.eq.s32.totalorder %v648_v40, 0  ;;  %vm649_vm3 = vcmp.lt.s32.totalorder %v648_v40, 2 }
  0x9b   : > { %1182 = vcosq.f32 %v642_v55  ;;  %v827_v57 = vshll.u32 %v826_v54, 30  ;;  %v850_v21 = vsub.s32 4, %v826_v54 }
  0x9c   : > { %1184 = vsinq.f32 %v642_v55 }
  0x9d   : > { %v828_v59 = vsub.s32 %v824_v51, %v827_v57  ;;  %v851_v16 = vsel %vm766_vm7, %v850_v21, %v826_v54 }
  0x9e   : > { %v853_v39 = vsel %vm765_vm8, 0, %v851_v16 }
  0x9f   : > { %v830_v15 = vsub.s32 0, %v828_v59  ;;  %v857_v9 = vadd.s32 3, %v853_v39  ;;  %v962_v28 = vand.u32 3, %v853_v39 }
  0xa1   : > { %v1092_v60 = vmin.u32 %v830_v15, %v828_v59  ;;  %v858_v42 = vand.u32 3, %v857_v9  ;;  %vm967_vm10 = vcmp.eq.s32.totalorder %v962_v28, 2  ;;  %vm964_vm12 = vcmp.eq.s32.totalorder %v962_v28, 0 }
  0xa2   : > { %vm963_vm14 = vcmp.lt.s32.totalorder %v962_v28, 2 }
  0xa3   : > { %v832_v62 = vclz %v1092_v60  ;;  %vm863_vm9 = vcmp.eq.s32.totalorder %v858_v42, 2  ;;  %vm860_vm11 = vcmp.eq.s32.totalorder %v858_v42, 0  ;;  %vm859_vm13 = vcmp.lt.s32.totalorder %v858_v42, 2 }
  0xa5   : > { %v1183_v48 = vpop.eup %1182  ;;  %v1093_v14 = vadd.s32 4294967294, %v832_v62 }
  0xa6   : > { %v1185_v36 = vpop.eup %1184  ;;  %v654_v27 = vxor.u32 2147483648, %v1183_v48 }
  0xa7   : > { %v651_v1 = vxor.u32 2147483648, %v1185_v36  ;;  %vm1094_vm5 = vcmp.lt.s32.totalorder %v1093_v14, 0 }
  0xa8   : > { %v655_v0 = vsel %vm653_vm15, %v654_v27, %v1185_v36  ;;  %v759_v58 = vsel %vm757_vm0, %v654_v27, %v1185_v36  ;;  %v835_v63 = vsel %vm1094_vm5, 0, %v1093_v14  ;;  %vm856_vm15 = vweird.f32 %v1515_v61 }
  0xa9   : > { %v652_v5 = vsel %vm650_vm1, %v1183_v48, %v651_v1  ;;  %v756_v29 = vsel %vm754_vm2, %v1183_v48, %v651_v1  ;;  %v836_v8 = vsub.s32 32, %v835_v63  ;;  %v837_v6 = vshll.u32 %v828_v59, %v835_v63 }
  0xaa   : > { %v656_v11 = vsel %vm649_vm3, %v652_v5, %v655_v0  ;;  %v760_v33 = vsel %vm753_vm4, %v756_v29, %v759_v58  ;;  %v840_v23 = vsub.s32 4294967266, %v835_v63 }
  0xab   : > { %v657_v52 = vsel %vm646_vm6, nan, %v656_v11  ;;  %v761_v56 = vsel %vm646_vm6, nan, %v760_v33  ;;  %v838_v12 = vshrl.u32 %v820_v30, %v836_v8 }
  0xac   : > { %658 = vst [vmem:[%s1425_s26 + $0xf] sm:$0x7] %v657_v52  ;;  %762 = vst [vmem:[%s1425_s26 + $0x12] sm:$0x7] %v761_v56  ;;  %v841_v13 = vadd.s32 127, %v840_v23 }
  0xad   : > { %v839_v17 = vor.u32 %v838_v12, %v837_v6 }
  0xae   : > { %v842_v18 = vshll.u32 %v841_v13, 23 }
  0xaf   : > { %v846_v4 = vcvt.s32.f32 %v839_v17 }
  0xb0   : > { %v843_v19 = vor.u32 4788187, %v842_v18 }
  0xb2   : > { %v844_v20 = vand.u32 2147483647, %v843_v19 }
  0xb4   : > { %v847_v25 = vmul.f32 %v846_v4, %v844_v20 }
  0xb6   : > { %v848_v35 = vxor.u32 2147483648, %v847_v25 }
  0xb8   : > { %v849_v37 = vsel %vm766_vm7, %v848_v35, %v847_v25 }
  0xb9   : > { %v852_v38 = vsel %vm765_vm8, %v1515_v61, %v849_v37 }
  0xba   : > { %1186 = vcosq.f32 %v852_v38 }
  0xbb   : > { %1188 = vsinq.f32 %v852_v38 }
  0xc4   : > { %v1187_v30 = vpop.eup %1186 }
  0xc5   : > { %v1189_v32 = vpop.eup %1188  ;;  %v864_v7 = vxor.u32 2147483648, %v1187_v30 }
  0xc6   : > { %v861_v2 = vxor.u32 2147483648, %v1189_v32 }
  0xc7   : > { %v865_v26 = vsel %vm863_vm9, %v864_v7, %v1189_v32  ;;  %v969_v41 = vsel %vm967_vm10, %v864_v7, %v1189_v32 }
  0xc8   : > { %v862_v43 = vsel %vm860_vm11, %v1187_v30, %v861_v2  ;;  %v966_v44 = vsel %vm964_vm12, %v1187_v30, %v861_v2 }
  0xc9   : > { %v866_v24 = vsel %vm859_vm13, %v862_v43, %v865_v26  ;;  %v970_v34 = vsel %vm963_vm14, %v966_v44, %v969_v41 }
  0xca   : > { %v867_v46 = vsel %vm856_vm15, nan, %v866_v24  ;;  %v971_v47 = vsel %vm856_vm15, nan, %v970_v34 }
  0xcb   : > { %868 = vst [vmem:[%s1425_s26 + $0x15] sm:$0x7] %v867_v46  ;;  %972 = vst [vmem:[%s1425_s26 + $0x18] sm:$0x7] %v971_v47 }
  0xcc   : > { %1233 = shalt.err (!%p1230_p4)
}
  0xcd   : > { %s1234_s11 = scalar_lea.hbm %s1755_s10, 512  ;;  %s1238_s16 = scalar_lea.hbm %s1802_s1, 1024 }
  0xce   : > { %p1235_p5 = scmp.ne.s32.totalorder %s1755_s10, %s1234_s11  ;;  %p1239_p0 = scmp.lt.u32.totalorder %s1755_s10, %s1802_s1 }
  0xcf   : > { %p1240_p1 = scmp.lt.u32.totalorder %s1238_s16, %s1234_s11  ;;  %p1242_p6 = scmp.lt.u32.totalorder %s1234_s11, %s1755_s10 }
  0xd0   : > { %p1236_p8 = pnand %p1235_p5, %p1815_p11 }
  0xd1   : > { %p1241_p3 = por %p1240_p1, %p1239_p0 }
  0xd2   : > { %p1237_p9 = pneg %p1236_p8 }
  0xd3   : > { %p1243_p12 = por %p1242_p6, %p1241_p3 }
  0xd5   : > { %p1244_p13 = pnand %p1243_p12, %p1237_p9 }
  0xd7   : > { %1247 = shalt.err (!%p1244_p13)
}
  0xd8   : > { %s1296_s23 = smov 128   ;;  %s1297_s24 = smov 256  }
  0xd9   : > { %s1298_s25 = smov 8  }
  0xda   : > { %1121 = dma.vmem_to_hbm [thread:$0]  (%p1815_p11), %s1749_s17, 512, %s1755_s10, %s974_s30, %s1296_s23, %s1297_s24, %s1298_s25  }
  0xdb PF: > { %s1001_s26 = sand.u32 1, %s1274_s6   ;;  %p1816_p7 = scmp.ne.s32.totalorder %s1807_s19, 0 }
  0xdc   : > { %p1817_p10 = scmp.ge.s32.totalorder %s1286_s9, 2  ;;  %s1002_s27 = scalar_lea.sflag [#allocation4], %s1001_s26 }
  0xde   : > { %p1128_p2 = pnand %p1817_p10, %p1816_p7 }
  0xe0   : > { %1269 = dma.done.wait (!%p1128_p2), %s1002_s27, 512  }
  0xe1   : > { %1271 = vsyncadd (!%p1128_p2), %s1002_s27, 4294966784  ;;  %p14_p4 = scmp.ge.s32.totalorder %s1334_s12, 4   ;;  %s1818_s6 = smov %s1278_s7 }
  0xe2   : > { %s1819_s7 = smov %s1282_s8  ;;  %s1820_s8 = smov %s1346_s15 }
  0xe3   : > { %s1821_s9 = smov %s1334_s12  ;;  %16 = sbr.rel (!%p14_p4) target bundleno = 5 (0x5), region = 69 }
  0xea   :  { %1007 = vsyncpa [#allocation3], 1 }
  0xeb   :  { %1009 = vsyncpa [#allocation3 + $0x1], 1 }
  0xec   :  { %1010 = vsyncpa [#allocation4], 1 }
  0xed   :  { %1012 = vsyncpa [#allocation4 + $0x1], 1 }

</bundles_post_ra>
